<compile_context>
chip_gen: v5e
topology: v5e:2x2
jax: 0.10.0
libtpu: 0.0.40
codegen_flags: <defaults>
</compile_context>

<pallas_src>
import jax
import jax.numpy as jnp
from jax.experimental import pallas as pl
from jax.experimental.pallas import tpu as pltpu

LANE = 128  # vreg lane width


def _round_up(a, b):
    return (a + b - 1) // b * b


def mlp_kernel(p_ref, x_ref, o_ref):
    """Fused Linear(3,5) + ReLU + Linear(5,1) on one dense batch tile.

    p_ref: (26,) f32 in SMEM, flat params:
             w1[j,k] -> p[3*j+k]   (j=0..4, k=0..2)
             b1[j]   -> p[15+j]
             w2[0,j] -> p[20+j]
             b2[0]   -> p[25]
    x_ref: (3, SB, 128) f32 in VMEM  (feature-major; batch fills sublanes+lanes)
    o_ref: (SB, 128)    f32 in VMEM
    """
    x0 = x_ref[0]  # (SB, 128) dense vregs
    x1 = x_ref[1]
    x2 = x_ref[2]

    acc = None
    # 5 hidden units, fully unrolled broadcast-FMAs on the VPU (MXU is
    # pointless for K=3 / K=5).
    for j in range(5):
        h = x0 * p_ref[3 * j + 0]
        h = h + x1 * p_ref[3 * j + 1]
        h = h + x2 * p_ref[3 * j + 2]
        h = h + p_ref[15 + j]
        h = jnp.maximum(h, 0.0)               # ReLU
        t = h * p_ref[20 + j]
        acc = t if acc is None else acc + t

    o_ref[...] = acc + p_ref[25]


def neural_network_forward(x, w1, b1, w2, b2, *, sb=2048):
    """x: (B, 3) f32 -> logits (B, 1) f32.

    Weights use the PyTorch nn.Linear layout:
      w1: (5, 3), b1: (5,), w2: (1, 5), b2: (1,)
    `sb` = sublane rows per grid step (each row = 128 batch elements).
    """
    B = x.shape[0]
    assert x.shape[1] == 3
    sb = _round_up(max(int(sb), 8), 8)

    rows = max(pl.cdiv(B, LANE), 1)           # number of 128-wide batch rows
    if rows >= 16:
        # Large batch: at least 2 parallel tiles (v7x megacore), rows per
        # block a multiple of 8 (sublane alignment), capped at `sb`.
        SB = min(sb, _round_up(pl.cdiv(rows, 2), 8))
    else:
        # Small batch: single block covering the (tiny) padded array.
        SB = rows
    NB = pl.cdiv(rows, SB)
    R = SB * NB
    Bp = R * LANE

    x32 = x.astype(jnp.float32)
    x_pad = jnp.pad(x32, ((0, Bp - B), (0, 0)))       # (Bp, 3), zero padded
    # Feature-major, batch split into (rows, lanes).  The .T is the one
    # layout pass; the reshape is free (contiguous).  Under jit XLA fuses it
    # with the pad / producer where possible.
    xt = x_pad.T.reshape(3, R, LANE)                   # (3, R, 128)

    # Flat SMEM parameter vector (26 scalars).
    params = jnp.concatenate(
        [w1.reshape(-1), b1.reshape(-1), w2.reshape(-1), b2.reshape(-1)]
    ).astype(jnp.float32)

    out = pl.pallas_call(
        mlp_kernel,
        out_shape=jax.ShapeDtypeStruct((R, LANE), jnp.float32),
        grid_spec=pl.GridSpec(
            grid=(NB,),
            in_specs=[
                # 26 scalars, resident in SMEM across all grid steps.
                pl.BlockSpec(memory_space=pltpu.MemorySpace.SMEM),
                # Dense feature-major batch tile.
                pl.BlockSpec((3, SB, LANE), lambda i: (0, i, 0)),
            ],
            out_specs=pl.BlockSpec((SB, LANE), lambda i: (i, 0)),
        ),
        compiler_params=pltpu.CompilerParams(
            dimension_semantics=("parallel",),          # batch tiles independent
            vmem_limit_bytes=32 * 1024 * 1024,          # safe on v5e/v6e/v7x
        ),
    )(params, xt)

    # (R, 128) row-major == padded batch order; free reshape + slice.
    return out.reshape(Bp, 1)[:B]


def init_params(key):
    """PyTorch nn.Linear-style init (uniform +-1/sqrt(fan_in)), (out, in) layout."""
    k1, k2, k3, k4 = jax.random.split(key, 4)
    bound1 = 1.0 / jnp.sqrt(3.0)
    bound2 = 1.0 / jnp.sqrt(5.0)
    w1 = jax.random.uniform(k1, (5, 3), jnp.float32, -bound1, bound1)
    b1 = jax.random.uniform(k2, (5,), jnp.float32, -bound1, bound1)
    w2 = jax.random.uniform(k3, (1, 5), jnp.float32, -bound2, bound2)
    b2 = jax.random.uniform(k4, (1,), jnp.float32, -bound2, bound2)
    return w1, b1, w2, b2


def _reference(x, w1, b1, w2, b2):
    return jnp.maximum(x @ w1.T + b1, 0.0) @ w2.T + b2


if __name__ == "__main__":
    key = jax.random.PRNGKey(0)
    k_params, k_x, k_x2 = jax.random.split(key, 3)

    w1, b1, w2, b2 = init_params(k_params)

    forward = jax.jit(neural_network_forward, static_argnames=("sb",))

    # Small-shape check: batch=8, in_features=3 (matches the module).
    x = jax.random.normal(k_x, (8, 3), jnp.float32)
    logits = forward(x, w1, b1, w2, b2)
    jax.block_until_ready(logits)
    ref = _reference(x, w1, b1, w2, b2)
    assert logits.shape == (8, 1)
    assert jnp.allclose(logits, ref, atol=1e-5, rtol=1e-5)

    # Multi-block / padded-tail path: rows=20 -> SB=8, NB=3 grid steps,
    # partial last 128-lane row + zero-padded rows (discarded on slice).
    x2 = jax.random.normal(k_x2, (2500, 3), jnp.float32)
    logits2 = forward(x2, w1, b1, w2, b2, sb=8)
    jax.block_until_ready(logits2)
    ref2 = _reference(x2, w1, b1, w2, b2)
    assert logits2.shape == (2500, 1)
    assert jnp.allclose(logits2, ref2, atol=1e-5, rtol=1e-5)

    print("KERNEL_OK")
</pallas_src>

<mosaic_0001>
module attributes {stable_mosaic.version = 11 : i64} {
  func.func @mlp_kernel(%arg0: i32, %arg1: memref<26xf32, #tpu.memory_space<smem>>, %arg2: memref<3x1x128xf32, #tpu.memory_space<vmem>>, %arg3: memref<1x128xf32, #tpu.memory_space<vmem>>) attributes {dimension_semantics = [#tpu.dimension_semantics<parallel>], iteration_bounds = array<i64: 1>, scalar_prefetch = 0 : i64, scratch_operands = 0 : i64, tpu.core_type = #tpu.core_type<tc>, window_params = [{transform_indices = @transform_0, window_bounds = array<i64: 26>}, {transform_indices = @transform_1, window_bounds = array<i64: 3, 1, 128>}, {transform_indices = @transform_2, window_bounds = array<i64: 1, 128>}]} {
    %c0 = arith.constant 0 : index
    %c0_0 = arith.constant 0 : index
    %c0_1 = arith.constant 0 : index
    %0 = vector.load %arg2[%c0, %c0_0, %c0_1] : memref<3x1x128xf32, #tpu.memory_space<vmem>>, vector<1x1x128xf32>
    %1 = vector.shape_cast %0 : vector<1x1x128xf32> to vector<1x128xf32>
    %c1 = arith.constant 1 : index
    %c0_2 = arith.constant 0 : index
    %c0_3 = arith.constant 0 : index
    %2 = vector.load %arg2[%c1, %c0_2, %c0_3] : memref<3x1x128xf32, #tpu.memory_space<vmem>>, vector<1x1x128xf32>
    %3 = vector.shape_cast %2 : vector<1x1x128xf32> to vector<1x128xf32>
    %c2 = arith.constant 2 : index
    %c0_4 = arith.constant 0 : index
    %c0_5 = arith.constant 0 : index
    %4 = vector.load %arg2[%c2, %c0_4, %c0_5] : memref<3x1x128xf32, #tpu.memory_space<vmem>>, vector<1x1x128xf32>
    %5 = vector.shape_cast %4 : vector<1x1x128xf32> to vector<1x128xf32>
    %c0_6 = arith.constant 0 : index
    %6 = memref.load %arg1[%c0_6] : memref<26xf32, #tpu.memory_space<smem>>
    %7 = vector.broadcast %6 : f32 to vector<1x128xf32>
    %8 = arith.mulf %1, %7 : vector<1x128xf32>
    %c1_7 = arith.constant 1 : index
    %9 = memref.load %arg1[%c1_7] : memref<26xf32, #tpu.memory_space<smem>>
    %10 = vector.broadcast %9 : f32 to vector<1x128xf32>
    %11 = arith.mulf %3, %10 : vector<1x128xf32>
    %12 = arith.addf %8, %11 : vector<1x128xf32>
    %c2_8 = arith.constant 2 : index
    %13 = memref.load %arg1[%c2_8] : memref<26xf32, #tpu.memory_space<smem>>
    %14 = vector.broadcast %13 : f32 to vector<1x128xf32>
    %15 = arith.mulf %5, %14 : vector<1x128xf32>
    %16 = arith.addf %12, %15 : vector<1x128xf32>
    %c15 = arith.constant 15 : index
    %17 = memref.load %arg1[%c15] : memref<26xf32, #tpu.memory_space<smem>>
    %18 = vector.broadcast %17 : f32 to vector<1x128xf32>
    %19 = arith.addf %16, %18 : vector<1x128xf32>
    %cst = arith.constant 0.000000e+00 : f32
    %20 = vector.broadcast %cst : f32 to vector<1x128xf32>
    %21 = arith.maximumf %19, %20 : vector<1x128xf32>
    %c20 = arith.constant 20 : index
    %22 = memref.load %arg1[%c20] : memref<26xf32, #tpu.memory_space<smem>>
    %23 = vector.broadcast %22 : f32 to vector<1x128xf32>
    %24 = arith.mulf %21, %23 : vector<1x128xf32>
    %c3 = arith.constant 3 : index
    %25 = memref.load %arg1[%c3] : memref<26xf32, #tpu.memory_space<smem>>
    %26 = vector.broadcast %25 : f32 to vector<1x128xf32>
    %27 = arith.mulf %1, %26 : vector<1x128xf32>
    %c4 = arith.constant 4 : index
    %28 = memref.load %arg1[%c4] : memref<26xf32, #tpu.memory_space<smem>>
    %29 = vector.broadcast %28 : f32 to vector<1x128xf32>
    %30 = arith.mulf %3, %29 : vector<1x128xf32>
    %31 = arith.addf %27, %30 : vector<1x128xf32>
    %c5 = arith.constant 5 : index
    %32 = memref.load %arg1[%c5] : memref<26xf32, #tpu.memory_space<smem>>
    %33 = vector.broadcast %32 : f32 to vector<1x128xf32>
    %34 = arith.mulf %5, %33 : vector<1x128xf32>
    %35 = arith.addf %31, %34 : vector<1x128xf32>
    %c16 = arith.constant 16 : index
    %36 = memref.load %arg1[%c16] : memref<26xf32, #tpu.memory_space<smem>>
    %37 = vector.broadcast %36 : f32 to vector<1x128xf32>
    %38 = arith.addf %35, %37 : vector<1x128xf32>
    %cst_9 = arith.constant 0.000000e+00 : f32
    %39 = vector.broadcast %cst_9 : f32 to vector<1x128xf32>
    %40 = arith.maximumf %38, %39 : vector<1x128xf32>
    %c21 = arith.constant 21 : index
    %41 = memref.load %arg1[%c21] : memref<26xf32, #tpu.memory_space<smem>>
    %42 = vector.broadcast %41 : f32 to vector<1x128xf32>
    %43 = arith.mulf %40, %42 : vector<1x128xf32>
    %44 = arith.addf %24, %43 : vector<1x128xf32>
    %c6 = arith.constant 6 : index
    %45 = memref.load %arg1[%c6] : memref<26xf32, #tpu.memory_space<smem>>
    %46 = vector.broadcast %45 : f32 to vector<1x128xf32>
    %47 = arith.mulf %1, %46 : vector<1x128xf32>
    %c7 = arith.constant 7 : index
    %48 = memref.load %arg1[%c7] : memref<26xf32, #tpu.memory_space<smem>>
    %49 = vector.broadcast %48 : f32 to vector<1x128xf32>
    %50 = arith.mulf %3, %49 : vector<1x128xf32>
    %51 = arith.addf %47, %50 : vector<1x128xf32>
    %c8 = arith.constant 8 : index
    %52 = memref.load %arg1[%c8] : memref<26xf32, #tpu.memory_space<smem>>
    %53 = vector.broadcast %52 : f32 to vector<1x128xf32>
    %54 = arith.mulf %5, %53 : vector<1x128xf32>
    %55 = arith.addf %51, %54 : vector<1x128xf32>
    %c17 = arith.constant 17 : index
    %56 = memref.load %arg1[%c17] : memref<26xf32, #tpu.memory_space<smem>>
    %57 = vector.broadcast %56 : f32 to vector<1x128xf32>
    %58 = arith.addf %55, %57 : vector<1x128xf32>
    %cst_10 = arith.constant 0.000000e+00 : f32
    %59 = vector.broadcast %cst_10 : f32 to vector<1x128xf32>
    %60 = arith.maximumf %58, %59 : vector<1x128xf32>
    %c22 = arith.constant 22 : index
    %61 = memref.load %arg1[%c22] : memref<26xf32, #tpu.memory_space<smem>>
    %62 = vector.broadcast %61 : f32 to vector<1x128xf32>
    %63 = arith.mulf %60, %62 : vector<1x128xf32>
    %64 = arith.addf %44, %63 : vector<1x128xf32>
    %c9 = arith.constant 9 : index
    %65 = memref.load %arg1[%c9] : memref<26xf32, #tpu.memory_space<smem>>
    %66 = vector.broadcast %65 : f32 to vector<1x128xf32>
    %67 = arith.mulf %1, %66 : vector<1x128xf32>
    %c10 = arith.constant 10 : index
    %68 = memref.load %arg1[%c10] : memref<26xf32, #tpu.memory_space<smem>>
    %69 = vector.broadcast %68 : f32 to vector<1x128xf32>
    %70 = arith.mulf %3, %69 : vector<1x128xf32>
    %71 = arith.addf %67, %70 : vector<1x128xf32>
    %c11 = arith.constant 11 : index
    %72 = memref.load %arg1[%c11] : memref<26xf32, #tpu.memory_space<smem>>
    %73 = vector.broadcast %72 : f32 to vector<1x128xf32>
    %74 = arith.mulf %5, %73 : vector<1x128xf32>
    %75 = arith.addf %71, %74 : vector<1x128xf32>
    %c18 = arith.constant 18 : index
    %76 = memref.load %arg1[%c18] : memref<26xf32, #tpu.memory_space<smem>>
    %77 = vector.broadcast %76 : f32 to vector<1x128xf32>
    %78 = arith.addf %75, %77 : vector<1x128xf32>
    %cst_11 = arith.constant 0.000000e+00 : f32
    %79 = vector.broadcast %cst_11 : f32 to vector<1x128xf32>
    %80 = arith.maximumf %78, %79 : vector<1x128xf32>
    %c23 = arith.constant 23 : index
    %81 = memref.load %arg1[%c23] : memref<26xf32, #tpu.memory_space<smem>>
    %82 = vector.broadcast %81 : f32 to vector<1x128xf32>
    %83 = arith.mulf %80, %82 : vector<1x128xf32>
    %84 = arith.addf %64, %83 : vector<1x128xf32>
    %c12 = arith.constant 12 : index
    %85 = memref.load %arg1[%c12] : memref<26xf32, #tpu.memory_space<smem>>
    %86 = vector.broadcast %85 : f32 to vector<1x128xf32>
    %87 = arith.mulf %1, %86 : vector<1x128xf32>
    %c13 = arith.constant 13 : index
    %88 = memref.load %arg1[%c13] : memref<26xf32, #tpu.memory_space<smem>>
    %89 = vector.broadcast %88 : f32 to vector<1x128xf32>
    %90 = arith.mulf %3, %89 : vector<1x128xf32>
    %91 = arith.addf %87, %90 : vector<1x128xf32>
    %c14 = arith.constant 14 : index
    %92 = memref.load %arg1[%c14] : memref<26xf32, #tpu.memory_space<smem>>
    %93 = vector.broadcast %92 : f32 to vector<1x128xf32>
    %94 = arith.mulf %5, %93 : vector<1x128xf32>
    %95 = arith.addf %91, %94 : vector<1x128xf32>
    %c19 = arith.constant 19 : index
    %96 = memref.load %arg1[%c19] : memref<26xf32, #tpu.memory_space<smem>>
    %97 = vector.broadcast %96 : f32 to vector<1x128xf32>
    %98 = arith.addf %95, %97 : vector<1x128xf32>
    %cst_12 = arith.constant 0.000000e+00 : f32
    %99 = vector.broadcast %cst_12 : f32 to vector<1x128xf32>
    %100 = arith.maximumf %98, %99 : vector<1x128xf32>
    %c24 = arith.constant 24 : index
    %101 = memref.load %arg1[%c24] : memref<26xf32, #tpu.memory_space<smem>>
    %102 = vector.broadcast %101 : f32 to vector<1x128xf32>
    %103 = arith.mulf %100, %102 : vector<1x128xf32>
    %104 = arith.addf %84, %103 : vector<1x128xf32>
    %c25 = arith.constant 25 : index
    %105 = memref.load %arg1[%c25] : memref<26xf32, #tpu.memory_space<smem>>
    %106 = vector.broadcast %105 : f32 to vector<1x128xf32>
    %107 = arith.addf %104, %106 : vector<1x128xf32>
    %c0_13 = arith.constant 0 : index
    %c0_14 = arith.constant 0 : index
    %108 = vector.load %arg3[%c0_13, %c0_14] : memref<1x128xf32, #tpu.memory_space<vmem>>, vector<1x128xf32>
    tpu.vector_store %arg3[%c0_13, %c0_14], %107 {strides = array<i32>} : memref<1x128xf32, #tpu.memory_space<vmem>>, vector<1x128xf32>,
    return
  }
  func.func @transform_0(%arg0: i32) -> i32 {
    %c0_i32 = arith.constant 0 : i32
    %c0_i32_0 = arith.constant 0 : i32
    return %c0_i32 : i32
  }
  func.func @transform_1(%arg0: i32) -> (i32, i32, i32) {
    %c0_i32 = arith.constant 0 : i32
    %c0_i32_0 = arith.constant 0 : i32
    %c0_i32_1 = arith.constant 0 : i32
    return %c0_i32, %arg0, %c0_i32_0 : i32, i32, i32
  }
  func.func @transform_2(%arg0: i32) -> (i32, i32) {
    %c0_i32 = arith.constant 0 : i32
    %c0_i32_0 = arith.constant 0 : i32
    return %arg0, %c0_i32 : i32, i32
  }
}

</mosaic_0001>

<bundles_post_ra>
// kernel: neural_network_forward.1
= control target key start
LH: loop header
LB: loop body
LE: loop exit
PB: predicated region body
PF: predicated region fallthrough
CT: control target
= control target key end

     0   :  { %7 = vsyncpa [#allocation3], 0  ;;  %s174_s12 = smov [#allocation2]   ;;  %s247_s0 = inlined_call_operand.vmem [shape: f32[26], index: 0, kind: input, shape index: {}]   ;;  %s248_s1 = inlined_call_operand.vmem [shape: f32[3,1,128], index: 1, kind: input, shape index: {}]   ;;  %s249_s2 = inlined_call_operand.vmem [shape: f32[1,128], index: 2, kind: output, shape index: {}]  }
   0x1   :  { %s13_s11 = sshll.u32 %s247_s0, 4  ;;  %s14_s11 = int_to_ptr.vmem [resolvable:$true] %s13_s11 }
   0x2   :  { %16 = dma.vmem_to_smem %s14_s11, 16, %s174_s12, [#allocation3]  }
   0x3   :  { %172 = dma.done.wait [#allocation3], 16  }
   0x4   :  { %173 = vsyncadd [#allocation3], 4294967280 }
   0x5   :  { %23 = sfence }
   0x6   :  { %s29_s13 = sld [smem:[#allocation2]]  ;;  %v198_v0 = vld [vmem:[%s248_s1] sm:$0x1]  ;;  %v205_v1 = vld [vmem:[%s248_s1 + $0x1] sm:$0x1] }
   0x7   :  { %s134_s14 = sld [smem:[#allocation2 + $0x1]]  ;;  %v210_v2 = vld [vmem:[%s248_s1 + $0x2] sm:$0x1] }
   0x8   :  { %s135_s15 = sld [smem:[#allocation2 + $0x2]] }
   0x9   :  { %s193_s16 = sld [smem:[#allocation2 + $0xf]] }
   0xa   :  { %s200_s19 = sld [smem:[#allocation2 + $0x14]] }
   0xb   :  { %s138_s21 = sld [smem:[#allocation2 + $0x3]] }
   0xc   :  { %v30_v3 = vstv %s29_s13  ;;  %s139_s24 = sld [smem:[#allocation2 + $0x4]] }
   0xd   :  { %v31_v4 = vmul.f32 %v30_v3, %v198_v0  ;;  %v33_v5 = vstv %s134_s14  ;;  %s140_s25 = sld [smem:[#allocation2 + $0x5]] }
   0xe   :  { %v34_v6 = vmul.f32 %v205_v1, %v33_v5  ;;  %v37_v7 = vstv %s135_s15  ;;  %s141_s26 = sld [smem:[#allocation2 + $0x10]] }
   0xf   :  { %v38_v8 = vmul.f32 %v210_v2, %v37_v7  ;;  %s215_s27 = sld [smem:[#allocation2 + $0x15]]  ;;  %v41_v14 = vstv %s193_s16 }
  0x10   :  { %v35_v9 = vadd.f32 %v34_v6, %v31_v4  ;;  %s143_s28 = sld [smem:[#allocation2 + $0x6]]  ;;  %v45_v30 = vstv %s200_s19 }
  0x11   :  { %v48_v10 = vstv %s138_s21  ;;  %s144_s1 = sld [smem:[#allocation2 + $0x7]] }
  0x12   :  { %v39_v11 = vadd.f32 %v38_v8, %v35_v9  ;;  %v49_v12 = vmul.f32 %v48_v10, %v198_v0  ;;  %v51_v13 = vstv %s139_s24  ;;  %s145_s29 = sld [smem:[#allocation2 + $0x8]] }
  0x13   :  { %v52_v15 = vmul.f32 %v205_v1, %v51_v13  ;;  %v55_v16 = vstv %s140_s25  ;;  %s220_s30 = sld [smem:[#allocation2 + $0x11]] }
  0x14   :  { %v56_v17 = vmul.f32 %v210_v2, %v55_v16  ;;  %s223_s3 = sld [smem:[#allocation2 + $0x16]]  ;;  %v42_v19 = vadd.f32 %v41_v14, %v39_v11  ;;  %v59_v20 = vstv %s141_s26 }
  0x15   :  { %v53_v18 = vadd.f32 %v52_v15, %v49_v12  ;;  %s148_s4 = sld [smem:[#allocation2 + $0x9]]  ;;  %v63_v33 = vstv %s215_s27 }
  0x16   :  { %v67_v21 = vstv %s143_s28  ;;  %s149_s5 = sld [smem:[#allocation2 + $0xa]]  ;;  %v43_v29 = vmax.f32 %v42_v19, 0.0 }
  0x17   :  { %v57_v22 = vadd.f32 %v56_v17, %v53_v18  ;;  %v68_v23 = vmul.f32 %v67_v21, %v198_v0  ;;  %v70_v24 = vstv %s144_s1  ;;  %s150_s6 = sld [smem:[#allocation2 + $0xb]] }
  0x18   :  { %v71_v25 = vmul.f32 %v205_v1, %v70_v24  ;;  %v74_v26 = vstv %s145_s29  ;;  %s227_s7 = sld [smem:[#allocation2 + $0x12]]  ;;  %v46_v41 = vmul.f32 %v45_v30, %v43_v29 }
  0x19   :  { %v60_v27 = vadd.f32 %v59_v20, %v57_v22  ;;  %v75_v28 = vmul.f32 %v210_v2, %v74_v26  ;;  %s230_s8 = sld [smem:[#allocation2 + $0x17]]  ;;  %v78_v34 = vstv %s220_s30 }
  0x1a   :  { %v72_v31 = vadd.f32 %v71_v25, %v68_v23  ;;  %s153_s9 = sld [smem:[#allocation2 + $0xc]]  ;;  %v82_v45 = vstv %s223_s3 }
  0x1b   :  { %v61_v32 = vmax.f32 %v60_v27, 0.0  ;;  %v86_v35 = vstv %s148_s4  ;;  %s154_s10 = sld [smem:[#allocation2 + $0xd]] }
  0x1c   :  { %v76_v36 = vadd.f32 %v75_v28, %v72_v31  ;;  %v87_v37 = vmul.f32 %v86_v35, %v198_v0  ;;  %v89_v38 = vstv %s149_s5  ;;  %s155_s11 = sld [smem:[#allocation2 + $0xe]] }
  0x1d   :  { %v90_v39 = vmul.f32 %v205_v1, %v89_v38  ;;  %v93_v40 = vstv %s150_s6  ;;  %s156_s12 = sld [smem:[#allocation2 + $0x13]]  ;;  %v64_v42 = vmul.f32 %v63_v33, %v61_v32 }
  0x1e   :  { %v79_v43 = vadd.f32 %v78_v34, %v76_v36  ;;  %v94_v44 = vmul.f32 %v210_v2, %v93_v40  ;;  %v97_v48 = vstv %s227_s7  ;;  %s157_s13 = sld [smem:[#allocation2 + $0x18]] }
  0x1f   :  { %v91_v46 = vadd.f32 %v90_v39, %v87_v37  ;;  %v65_v53 = vadd.f32 %v64_v42, %v46_v41  ;;  %v101_v59 = vstv %s230_s8  ;;  %s158_s14 = sld [smem:[#allocation2 + $0x19]] }
  0x20   :  { %v80_v47 = vmax.f32 %v79_v43, 0.0  ;;  %v105_v49 = vstv %s153_s9 }
  0x21   :  { %v95_v50 = vadd.f32 %v94_v44, %v91_v46  ;;  %v106_v51 = vmul.f32 %v105_v49, %v198_v0  ;;  %v108_v52 = vstv %s154_s10 }
  0x22   :  { %v83_v54 = vmul.f32 %v82_v45, %v80_v47  ;;  %v109_v55 = vmul.f32 %v205_v1, %v108_v52  ;;  %v112_v56 = vstv %s155_s11 }
  0x23   :  { %v98_v57 = vadd.f32 %v97_v48, %v95_v50  ;;  %v113_v58 = vmul.f32 %v210_v2, %v112_v56  ;;  %v116_v62 = vstv %s156_s12 }
  0x24   :  { %v110_v60 = vadd.f32 %v109_v55, %v106_v51  ;;  %v84_v63 = vadd.f32 %v83_v54, %v65_v53  ;;  %v120_v0 = vstv %s157_s13 }
  0x25   :  { %v99_v61 = vmax.f32 %v98_v57, 0.0  ;;  %v124_v9 = vstv %s158_s14 }
  0x26   :  { %v114_v3 = vadd.f32 %v113_v58, %v110_v60 }
  0x27   :  { %v102_v4 = vmul.f32 %v101_v59, %v99_v61 }
  0x28   :  { %v117_v5 = vadd.f32 %v116_v62, %v114_v3 }
  0x29   :  { %v103_v6 = vadd.f32 %v102_v4, %v84_v63 }
  0x2a   :  { %v118_v7 = vmax.f32 %v117_v5, 0.0 }
  0x2c   :  { %v121_v8 = vmul.f32 %v120_v0, %v118_v7 }
  0x2e   :  { %v122_v10 = vadd.f32 %v121_v8, %v103_v6 }
  0x30   :  { %v125_v1 = vadd.f32 %v124_v9, %v122_v10 }
  0x32   :  { %126 = vst [vmem:[%s249_s2] sm:$0x1] %v125_v1 }
  0x33   :  { %131 = vsyncpa [#allocation3], 1 }

</bundles_post_ra>
